<compile_context>
chip_gen: v7x
topology: tpu7x:2x2x1
jax: 0.10.0
libtpu: 0.0.40
codegen_flags: <defaults>
</compile_context>

<pallas_src>
import jax
import jax.numpy as jnp
from jax.experimental import pallas as pl
from jax.experimental.pallas import tpu as pltpu

_TARGET_BLOCK_BYTES = 4 * 1024 * 1024   # ~4 MiB per input block per grid step
_MIN_SPLIT_BYTES = 2 * 1024 * 1024      # force >= 2 grid steps above this (v7x: 2 TCs)
_VMEM_LIMIT_BYTES = 48 * 1024 * 1024    # explicit scoped-VMEM budget (< 64 MiB v7x physical)


def _swish_kernel(x_ref, o_ref):
    # Elementwise sigmoid(x) * x in f32.  exp lands on the EUP slot, the
    # multiply on the VPU — both fully hidden under the HBM roofline, so no
    # compute micro-optimization is warranted.
    x = x_ref[...].astype(jnp.float32)
    o_ref[...] = (jax.nn.sigmoid(x) * x).astype(o_ref.dtype)


def _round_up(a, b):
    return ((a + b - 1) // b) * b


def _sublane_granularity(dtype):
    # Sub-32-bit dtypes pack along sublanes: one vreg is [8,128] f32,
    # [16,128] bf16, [32,128] int8/fp8.
    itemsize = jnp.dtype(dtype).itemsize
    return {4: 8, 2: 16, 1: 32}.get(itemsize, 8)


def _choose_lane(n):
    # Prefer wide lane-dense slabs; fall back to 128 (minimal pad waste) for
    # awkward sizes.  All choices are multiples of 128 -> unmasked stores.
    for lane in (512, 256, 128):
        if n % lane == 0:
            return lane
    return 128


def swish(x):
    """Swish forward. Accepts any shape / float dtype, returns the same shape."""
    orig_shape = x.shape
    orig_dtype = x.dtype
    n = x.size
    itemsize = jnp.dtype(orig_dtype).itemsize
    sub = _sublane_granularity(orig_dtype)

    lane = _choose_lane(n)
    n_pad = _round_up(n, lane)
    needs_pad = n_pad != n

    flat = x.reshape(-1)
    if needs_pad:
        # Tail pad only (< lane elements). sigmoid(0)*0 = 0, and the tail is
        # sliced off below; the pad is allowed to fuse into the input DMA.
        flat = jnp.pad(flat, (0, n_pad - n))
    rows = n_pad // lane
    x2 = flat.reshape(rows, lane)

    # Per-step block: ~4 MiB, sublane-granular, never larger than the array,
    # and split into >= 2 steps for medium/large inputs (v7x megacore).
    if rows <= sub:
        block_rows = rows  # full-extent dim is always a legal block extent
    else:
        block_rows = max(sub, (_TARGET_BLOCK_BYTES // (lane * itemsize)) // sub * sub)
        block_rows = min(block_rows, (rows // sub) * sub)
        total_bytes = rows * lane * itemsize
        if total_bytes >= _MIN_SPLIT_BYTES and pl.cdiv(rows, block_rows) < 2:
            block_rows = max(sub, _round_up(pl.cdiv(rows, 2), sub))

    grid = (pl.cdiv(rows, block_rows),)  # ragged last block is masked by Pallas

    compiler_params = pltpu.CompilerParams(
        dimension_semantics=("parallel",),
        vmem_limit_bytes=_VMEM_LIMIT_BYTES,
        allow_input_fusion=[True] if needs_pad else None,
    )

    out = pl.pallas_call(
        _swish_kernel,
        out_shape=jax.ShapeDtypeStruct((rows, lane), orig_dtype),
        grid_spec=pltpu.PrefetchScalarGridSpec(
            num_scalar_prefetch=0,
            grid=grid,
            in_specs=[pl.BlockSpec((block_rows, lane), lambda i: (i, 0))],
            out_specs=pl.BlockSpec((block_rows, lane), lambda i: (i, 0)),
        ),
        compiler_params=compiler_params,
        cost_estimate=pl.CostEstimate(
            flops=2 * n_pad,
            transcendentals=n_pad,
            bytes_accessed=2 * n_pad * itemsize,
        ),
    )(x2)

    out_flat = out.reshape(-1)
    if needs_pad:
        out_flat = out_flat[:n]
    return out_flat.reshape(orig_shape)


def _reference(x):
    return jax.nn.sigmoid(x) * x


if __name__ == "__main__":
    key = jax.random.PRNGKey(0)
    x = jax.random.normal(key, (2, 4, 16, 16), jnp.float32)

    y = swish(x)
    y = jax.block_until_ready(y)

    y_ref = _reference(x)
    assert y.shape == x.shape
    assert y.dtype == x.dtype
    assert jnp.allclose(y, y_ref, atol=1e-5, rtol=1e-5), "mismatch vs reference"

    print("KERNEL_OK")
</pallas_src>

<mosaic_0001>
module attributes {stable_mosaic.version = 11 : i64} {
  func.func @_swish_kernel(%arg0: i32, %arg1: memref<4x512xf32, #tpu.memory_space<vmem>>, %arg2: memref<4x512xf32, #tpu.memory_space<vmem>>) attributes {dimension_semantics = [#tpu.dimension_semantics<parallel>], iteration_bounds = array<i64: 1>, scalar_prefetch = 0 : i64, scratch_operands = 0 : i64, tpu.core_type = #tpu.core_type<tc>, window_params = [{transform_indices = @transform_0, window_bounds = array<i64: 4, 512>}, {transform_indices = @transform_1, window_bounds = array<i64: 4, 512>}]} {
    %c0 = arith.constant 0 : index
    %c0_0 = arith.constant 0 : index
    %0 = vector.load %arg1[%c0, %c0_0] : memref<4x512xf32, #tpu.memory_space<vmem>>, vector<4x512xf32>
    %1 = arith.negf %0 : vector<4x512xf32>
    %2 = math.exp %1 : vector<4x512xf32>
    %cst = arith.constant 1.000000e+00 : f32
    %3 = vector.broadcast %cst : f32 to vector<4x512xf32>
    %4 = arith.addf %3, %2 : vector<4x512xf32>
    %5 = arith.divf %3, %4 : vector<4x512xf32>
    %6 = arith.mulf %5, %0 : vector<4x512xf32>
    %c0_1 = arith.constant 0 : index
    %c0_2 = arith.constant 0 : index
    %7 = vector.load %arg2[%c0_1, %c0_2] : memref<4x512xf32, #tpu.memory_space<vmem>>, vector<4x512xf32>
    tpu.vector_store %arg2[%c0_1, %c0_2], %6 {strides = array<i32>} : memref<4x512xf32, #tpu.memory_space<vmem>>, vector<4x512xf32>,
    return
  }
  func.func @transform_0(%arg0: i32) -> (i32, i32) {
    %c0_i32 = arith.constant 0 : i32
    %c0_i32_0 = arith.constant 0 : i32
    return %arg0, %c0_i32 : i32, i32
  }
  func.func @transform_1(%arg0: i32) -> (i32, i32) {
    %c0_i32 = arith.constant 0 : i32
    %c0_i32_0 = arith.constant 0 : i32
    return %arg0, %c0_i32 : i32, i32
  }
}

</mosaic_0001>

<bundles_post_ra>
// kernel: tpu_custom_call.1
= control target key start
LH: loop header
LB: loop body
LE: loop exit
PB: predicated region body
PF: predicated region fallthrough
CT: control target
= control target key end

     0   :  { %6 = vsyncpa [#allocation3], 0  ;;  %s150_s0 = inlined_call_operand.hbm [shape: f32[4,512], index: 0, kind: input, shape index: {}]   ;;  %s151_s1 = inlined_call_operand.hbm [shape: f32[4,512], index: 1, kind: output, shape index: {}]  }
   0x1   :  { %7 = vsyncpa [#allocation4], 0  ;;  %s114_s6 = smov [#allocation2]   ;;  %s66_s10 = scalar_lea.hbm %s150_s0, 256 }
   0x2   :  { %s14_s7 = sshll.u32 %s114_s6, 4  ;;  %p67_p0 = scmp.ne.s32.totalorder %s150_s0, %s66_s10  ;;  %s15_s7 = int_to_ptr.vmem [resolvable:$true] %s14_s7 }
   0x3   :  { %p70_p1 = scmp.lt.u32.totalorder %s66_s10, %s150_s0 }
   0x5   :  { %p72_p2 = pnand %p70_p1, %p67_p0 }
   0x7   :  { %75 = shalt.err (!%p72_p2)
}
   0x8   :  { %s76_s15 = scalar_lea.vmem %s15_s7, 256  ;;  %p81_p4 = scmp.lt.s32.totalorder %s15_s7, %s15_s7 }
   0x9   :  { %p77_p3 = scmp.ne.s32.totalorder %s15_s7, %s76_s15  ;;  %p82_p5 = scmp.lt.s32.totalorder %s76_s15, %s76_s15 }
   0xb   :  { %p83_p6 = por %p82_p5, %p81_p4 }
   0xd   :  { %p84_p7 = pnand %p83_p6, %p77_p3 }
   0xf   :  { %87 = shalt.err (!%p84_p7)
}
  0x10   :  { %17 = dma.hbm_to_vmem [thread:$0]  %s150_s0, 256, %s15_s7, [#allocation3]  }
  0x11   :  { %110 = dma.done.wait [#allocation3], 256  }
  0x12   :  { %111 = vsyncadd [#allocation3], 4294967040  ;;  %v21_v0 = vld [vmem:[#allocation2] sm:$0xff]  ;;  %v22_v1 = vld [vmem:[#allocation2 + $0x8] sm:$0xff]  ;;  %s115_s18 = smov [#allocation5]  }
  0x13   :  { %v54_v2 = vmul.f32 -1.442695, %v21_v0  ;;  %v55_v3 = vmul.f32 -1.442695, %v22_v1  ;;  %s45_s19 = sshll.u32 %s115_s18, 4  ;;  %s46_s19 = int_to_ptr.vmem [resolvable:$true] %s45_s19 }
  0x14   :  { %s88_s0 = scalar_lea.vmem %s46_s19, 256  ;;  %p93_p9 = scmp.lt.s32.totalorder %s46_s19, %s46_s19 }
  0x15   :  { %58 = vpow2.f32 %v54_v2  ;;  %p89_p8 = scmp.ne.s32.totalorder %s46_s19, %s88_s0  ;;  %p94_p10 = scmp.lt.s32.totalorder %s88_s0, %s88_s0 }
  0x16   :  { %60 = vpow2.f32 %v55_v3 }
  0x17   :  { %p95_p11 = por %p94_p10, %p93_p9 }
  0x19   :  { %p96_p12 = pnand %p95_p11, %p89_p8 }
  0x1f   :  { %v59_v4 = vpop.eup %58 }
  0x20   :  { %v61_v5 = vpop.eup %60  ;;  %v29_v6 = vadd.f32 1.0, %v59_v4 }
  0x21   :  { %v30_v7 = vadd.f32 1.0, %v61_v5 }
  0x22   :  { %62 = vrcp.f32 %v29_v6 }
  0x23   :  { %64 = vrcp.f32 %v30_v7 }
  0x2c   :  { %v63_v8 = vpop.eup %62 }
  0x2d   :  { %v65_v9 = vpop.eup %64  ;;  %v35_v10 = vmul.f32 %v63_v8, %v21_v0 }
  0x2e   :  { %v36_v11 = vmul.f32 %v65_v9, %v22_v1 }
  0x2f   :  { %37 = vst [vmem:[#allocation5] sm:$0xff] %v35_v10 }
  0x30   :  { %38 = vst [vmem:[#allocation5 + $0x8] sm:$0xff] %v36_v11 }
  0x31   :  { %99 = shalt.err (!%p96_p12)
}
  0x32   :  { %s100_s22 = scalar_lea.hbm %s151_s1, 256 }
  0x33   :  { %p101_p13 = scmp.ne.s32.totalorder %s151_s1, %s100_s22  ;;  %p104_p0 = scmp.lt.u32.totalorder %s100_s22, %s151_s1 }
  0x35   :  { %p106_p1 = pnand %p104_p0, %p101_p13 }
  0x37   :  { %109 = shalt.err (!%p106_p1)
}
  0x38   :  { %48 = dma.vmem_to_hbm [thread:$0]  %s46_s19, 256, %s151_s1, [#allocation4]  }
  0x39   :  { %112 = dma.done.wait [#allocation4], 256  }
  0x3a   :  { %113 = vsyncadd [#allocation4], 4294967040 }
  0x3b   :  { %52 = vsyncpa [#allocation3], 1 }
  0x3c   :  { %53 = vsyncpa [#allocation4], 1 }

</bundles_post_ra>
